<compile_context>
chip_gen: v7x
topology: tpu7x:2x2x1
jax: 0.10.0
libtpu: 0.0.40
codegen_flags: <defaults>
</compile_context>

<pallas_src>
import functools

import jax
import jax.numpy as jnp
import numpy as np
from jax.experimental import pallas as pl
from jax.experimental.pallas import tpu as pltpu

EPS = 1e-5


def _class_dsu_kernel(onehot_ref, inv_n_ref, x_ref, eps_mu_ref, eps_std_ref,
                      out_ref, *, apply_with_mxu):
    onehot = onehot_ref[...]                            # [B, K, HW] f32 in {0,1}
    x = x_ref[...]                                      # [B, Ct, HW] f32
    B, Ct, HW = x.shape
    K = onehot.shape[1]

    # ---- fused per-class first/second moments: ONE MXU pass for all classes.
    xx = jnp.concatenate([x, x * x], axis=1)            # [B, 2Ct, HW]
    S = jnp.einsum('bcp,bkp->bck', xx, onehot,
                   preferred_element_type=jnp.float32)  # [B, 2Ct, K]
    inv_n = inv_n_ref[...][:, None, :]                  # [B, 1, K]
    mean = S[:, :Ct, :] * inv_n                         # [B, Ct, K]
    ex2 = S[:, Ct:, :] * inv_n                          # [B, Ct, K]
    # Single-pass variance (clamped >= 0).  Can cancel when |mean| >> std;
    # fine for normalized activations -- switch to a mean-shifted second
    # moment if that regime ever matters.
    var = jnp.maximum(ex2 - mean * mean, 0.0)
    std = jnp.sqrt(var + EPS)                           # [B, Ct, K]
    inv_std = jax.lax.rsqrt(var + EPS)                  # EUP slot; no divides

    # ---- batch uncertainty + reparameterize on the tiny [B, Ct, K] stats ----
    inv_bm1 = 1.0 / float(B - 1)

    def sqrtvar(t):  # torch.var(dim=0, unbiased=True) -> sqrt(var + eps)
        m = jnp.mean(t, axis=0, keepdims=True)
        d = t - m
        return jnp.sqrt(jnp.sum(d * d, axis=0, keepdims=True) * inv_bm1 + EPS)

    beta = mean + eps_mu_ref[...] * sqrtvar(mean)       # [B, Ct, K]
    gamma = std + eps_std_ref[...] * sqrtvar(std)       # [B, Ct, K]

    # Fold normalize+affine into per-(b,c,k) coefficients:
    #   mask * ((x - mean)/std * gamma + beta) == mask * (x*A + Bc)
    A = gamma * inv_std                                 # [B, Ct, K]
    Bc = beta - mean * A                                # [B, Ct, K]

    # ---- disjoint-mask apply ------------------------------------------------
    if apply_with_mxu:
        # Large K: one stacked matmul against the resident one-hot.
        AB = jnp.concatenate([A, Bc], axis=1)           # [B, 2Ct, K]
        ABp = jnp.einsum('bck,bkp->bcp', AB, onehot,
                         preferred_element_type=jnp.float32)  # [B, 2Ct, HW]
        a_pix = ABp[:, :Ct, :]
        b_pix = ABp[:, Ct:, :]
    else:
        # Small K: a K-contraction matmul wastes >90% of MXU cycles
        # (K << 128/256), so use an unrolled VPU FMA over the disjoint masks.
        a_pix = jnp.zeros((B, Ct, HW), jnp.float32)
        b_pix = jnp.zeros((B, Ct, HW), jnp.float32)
        for k in range(K):                              # static unroll, small K
            m = onehot[:, k:k + 1, :]                   # [B, 1, HW]
            a_pix = a_pix + m * A[:, :, k:k + 1]        # [B, Ct, 1] lane bcast
            b_pix = b_pix + m * Bc[:, :, k:k + 1]
    # Pixels whose label maps to no class get a_pix = b_pix = 0 -> output 0,
    # matching the reference's `if inclass` skip.
    out_ref[...] = (x * a_pix + b_pix).astype(out_ref.dtype)


def _vmem_bytes_estimate(B, ct, HW, K):
    """Per-grid-step working set: IO blocks (double-buffered), the resident
    one-hot map, the stacked-moment / apply temporaries and the stats chain."""
    f32 = 4
    x_blk = B * ct * HW * f32            # one [B, ct, HW] f32 block
    onehot_b = B * K * HW * f32          # resident one-hot map
    stats_b = B * ct * K * f32           # one [B, ct, K] stats tensor
    io = 2 * (2 * x_blk) + 2 * onehot_b + 2 * 2 * stats_b
    body = 4 * x_blk + 16 * stats_b      # xx concat, a_pix/b_pix, stats chain
    return io + body + (2 << 20)         # + slack for Mosaic internals


def _vmem_budget_bytes():
    """Generation-aware VMEM budget (tile selection + vmem_limit_bytes)."""
    cap = None
    try:
        cap = getattr(pltpu.get_tpu_info(), "vmem_capacity_bytes", None)
    except Exception:
        cap = None
    if cap is None:
        cap = 64 * 1024 * 1024           # unknown: assume v7x-like 64 MiB/TC
    if cap >= 100 * 1024 * 1024:         # v5e / v6e: 128 MiB per core
        return 96 * 1024 * 1024
    return 40 * 1024 * 1024              # v7x: 64 MiB per TC, leave headroom


def _choose_c_tile(B, C, HW, K, budget_bytes, min_steps=4):
    """Largest multiple-of-8 divisor of C (or C itself) that fits the budget
    AND keeps >= min_steps grid steps (pipelining + v7x dual-TC sharding);
    otherwise fall back to the fitting tile with the most steps."""
    cands = sorted({C} | {ct for ct in range(8, C, 8) if C % ct == 0},
                   reverse=True)                         # largest first
    fitting = [ct for ct in cands
               if _vmem_bytes_estimate(B, ct, HW, K) <= budget_bytes]
    if not fitting:
        return cands[-1]                                 # smallest; may spill
    piped = [ct for ct in fitting if C // ct >= min_steps]
    if piped:
        return piped[0]                                  # biggest tile, >= 4 steps
    return fitting[-1]                                   # maximize step count


def class_dsu_forward(x, gt, eps_mu, eps_std, num_class, c_tile=None):
    B, C, H, W = x.shape
    K = num_class + 1
    # torch.var(dim=0, unbiased=True) on a single sample is undefined; same
    # hazard exists in the PyTorch reference.
    assert B >= 2, "class_dsu requires batch size >= 2"
    assert eps_mu.shape == (B, C, K) and eps_std.shape == (B, C, K)
    HW = H * W

    # ---- wrapper-side layout plumbing + hoisted precompute (runs once) ------
    x_flat = x.reshape(B, C, HW).astype(jnp.float32)
    gt_flat = gt.reshape(B, HW).astype(jnp.int32)

    # One-hot class map + per-class pixel counts, computed ONCE and kept
    # resident in VMEM across all channel tiles (constant index_map below).
    # labels 0..num_class-1 -> themselves, 255 -> num_class, anything else -> -1
    gt_idx = jnp.where(gt_flat == 255, num_class,
                       jnp.where(gt_flat < num_class, gt_flat, -1))   # [B, HW]
    k_ids = jnp.arange(K, dtype=jnp.int32)
    onehot = (gt_idx[:, None, :] == k_ids[None, :, None]).astype(jnp.float32)
    count = jnp.sum(onehot, axis=-1)                                  # [B, K]
    inv_n = 1.0 / jnp.maximum(count, 1.0)                             # [B, K]

    eps_mu = eps_mu.astype(jnp.float32)
    eps_std = eps_std.astype(jnp.float32)

    budget = _vmem_budget_bytes()
    if c_tile is None:
        c_tile = _choose_c_tile(B, C, HW, K, budget)
    assert C % c_tile == 0 and (c_tile == C or c_tile % 8 == 0)

    kernel = functools.partial(_class_dsu_kernel, apply_with_mxu=(K > 8))

    grid_spec = pltpu.PrefetchScalarGridSpec(
        num_scalar_prefetch=0,
        grid=(C // c_tile,),
        in_specs=[
            pl.BlockSpec((B, K, HW), lambda c: (0, 0, 0)),       # onehot (resident)
            pl.BlockSpec((B, K), lambda c: (0, 0)),              # inv_n  (resident)
            pl.BlockSpec((B, c_tile, HW), lambda c: (0, c, 0)),  # x tile
            pl.BlockSpec((B, c_tile, K), lambda c: (0, c, 0)),   # eps_mu
            pl.BlockSpec((B, c_tile, K), lambda c: (0, c, 0)),   # eps_std
        ],
        out_specs=pl.BlockSpec((B, c_tile, HW), lambda c: (0, c, 0)),
    )

    out_flat = pl.pallas_call(
        kernel,
        out_shape=jax.ShapeDtypeStruct((B, C, HW), jnp.float32),
        grid_spec=grid_spec,
        compiler_params=pltpu.CompilerParams(
            dimension_semantics=("parallel",),     # channel tiles independent
            vmem_limit_bytes=int(budget)),
    )(onehot, inv_n, x_flat, eps_mu, eps_std)
    return out_flat.reshape(B, C, H, W)


def class_dsu_ref(x, gt, eps_mu, eps_std, num_class):
    """Pure-JAX reference mirroring the PyTorch forward (same epsilon draws)."""
    B, C, H, W = x.shape
    ids = list(range(num_class)) + [255]
    out = jnp.zeros_like(x)
    for k, cls in enumerate(ids):
        mask = (gt == cls).astype(jnp.float32)
        mask4 = mask[:, None, :, :]
        mx = x * mask4
        npix = jnp.sum(mask4, axis=(2, 3))
        npix = jnp.where(npix == 0.0, 1.0, npix)
        mean = jnp.sum(mx, axis=(2, 3)) / npix
        var = jnp.sum((mask4 * (mx - mean[:, :, None, None])) ** 2,
                      axis=(2, 3)) / npix
        std = jnp.sqrt(var + EPS)

        def sqrtvar(t):
            return jnp.sqrt(jnp.var(t, axis=0, keepdims=True, ddof=1) + EPS)

        beta = mean + eps_mu[:, :, k] * sqrtvar(mean)
        gamma = std + eps_std[:, :, k] * sqrtvar(std)
        normed = (mx - mean[:, :, None, None]) / std[:, :, None, None]
        out = out + mask4 * (normed * gamma[:, :, None, None]
                             + beta[:, :, None, None])
    return out


if __name__ == "__main__":
    B, C, H, W = 2, 4, 16, 16
    num_class = 3
    K = num_class + 1

    key = jax.random.PRNGKey(0)
    kx, kg, km, ks = jax.random.split(key, 4)

    x = jax.random.normal(kx, (B, C, H, W), dtype=jnp.float32)
    label_vals = jnp.array([0, 1, 2, 255], dtype=jnp.int32)
    gt = label_vals[jax.random.randint(kg, (B, H, W), 0, 4)]

    # deterministic stand-ins for torch.randn_like in _reparameterize
    eps_mu = jax.random.normal(km, (B, C, K), dtype=jnp.float32)
    eps_std = jax.random.normal(ks, (B, C, K), dtype=jnp.float32)

    out = class_dsu_forward(x, gt, eps_mu, eps_std, num_class)
    out = jax.block_until_ready(out)

    ref = class_dsu_ref(x, gt, eps_mu, eps_std, num_class)
    np.testing.assert_allclose(np.asarray(out), np.asarray(ref),
                               rtol=1e-3, atol=1e-3)
    print("KERNEL_OK")
</pallas_src>

<mosaic_0001>
module attributes {stable_mosaic.version = 11 : i64} {
  func.func @_class_dsu_kernel(%arg0: i32, %arg1: memref<2x4x256xf32, #tpu.memory_space<vmem>>, %arg2: memref<2x4xf32, #tpu.memory_space<vmem>>, %arg3: memref<2x4x256xf32, #tpu.memory_space<vmem>>, %arg4: memref<2x4x4xf32, #tpu.memory_space<vmem>>, %arg5: memref<2x4x4xf32, #tpu.memory_space<vmem>>, %arg6: memref<2x4x256xf32, #tpu.memory_space<vmem>>) attributes {dimension_semantics = [#tpu.dimension_semantics<parallel>], iteration_bounds = array<i64: 1>, scalar_prefetch = 0 : i64, scratch_operands = 0 : i64, tpu.core_type = #tpu.core_type<tc>, window_params = [{pipeline_mode = #tpu.pipeline_mode<synchronous>, transform_indices = @transform_0, window_bounds = array<i64: 2, 4, 256>}, {pipeline_mode = #tpu.pipeline_mode<synchronous>, transform_indices = @transform_1, window_bounds = array<i64: 2, 4>}, {transform_indices = @transform_2, window_bounds = array<i64: 2, 4, 256>}, {transform_indices = @transform_3, window_bounds = array<i64: 2, 4, 4>}, {transform_indices = @transform_4, window_bounds = array<i64: 2, 4, 4>}, {transform_indices = @transform_5, window_bounds = array<i64: 2, 4, 256>}]} {
    %c0 = arith.constant 0 : index
    %c0_0 = arith.constant 0 : index
    %c0_1 = arith.constant 0 : index
    %0 = vector.load %arg1[%c0, %c0_0, %c0_1] : memref<2x4x256xf32, #tpu.memory_space<vmem>>, vector<2x4x256xf32>
    %c0_2 = arith.constant 0 : index
    %c0_3 = arith.constant 0 : index
    %c0_4 = arith.constant 0 : index
    %1 = vector.load %arg3[%c0_2, %c0_3, %c0_4] : memref<2x4x256xf32, #tpu.memory_space<vmem>>, vector<2x4x256xf32>
    %2 = arith.mulf %1, %1 : vector<2x4x256xf32>
    %3 = tpu.concatenate %1, %2 in 1 : vector<2x4x256xf32>, vector<2x4x256xf32> -> vector<2x8x256xf32>
    "tpu.trace_start"() <{level = 10 : i32, message = "bcp,bkp->bck"}> : () -> ()
    %cst = arith.constant dense<0.000000e+00> : vector<2x8x4xf32>
    %4 = tpu.matmul %3, %0, %cst {dimension_numbers = #tpu.dot_dimension_numbers<[2], [2], [1], [1], [0, 0, 0, 1, 1, 1], [0], [0]>} : vector<2x8x256xf32>, vector<2x4x256xf32>, vector<2x8x4xf32> -> vector<2x8x4xf32>
    "tpu.trace_stop"() : () -> ()
    %c0_5 = arith.constant 0 : index
    %c0_6 = arith.constant 0 : index
    %5 = vector.load %arg2[%c0_5, %c0_6] : memref<2x4xf32, #tpu.memory_space<vmem>>, vector<2x4xf32>
    %6 = vector.shape_cast %5 : vector<2x4xf32> to vector<2x1x4xf32>
    %7 = vector.extract_strided_slice %4 {offsets = [0, 0, 0], sizes = [2, 4, 4], strides = [1, 1, 1]} : vector<2x8x4xf32> to vector<2x4x4xf32>
    %8 = vector.broadcast %6 : vector<2x1x4xf32> to vector<2x4x4xf32>
    %9 = arith.mulf %7, %8 : vector<2x4x4xf32>
    %10 = vector.extract_strided_slice %4 {offsets = [0, 4, 0], sizes = [2, 4, 4], strides = [1, 1, 1]} : vector<2x8x4xf32> to vector<2x4x4xf32>
    %11 = vector.broadcast %6 : vector<2x1x4xf32> to vector<2x4x4xf32>
    %12 = arith.mulf %10, %11 : vector<2x4x4xf32>
    %13 = arith.mulf %9, %9 : vector<2x4x4xf32>
    %14 = arith.subf %12, %13 : vector<2x4x4xf32>
    %cst_7 = arith.constant 0.000000e+00 : f32
    %15 = vector.broadcast %cst_7 : f32 to vector<2x4x4xf32>
    %16 = arith.maximumf %14, %15 : vector<2x4x4xf32>
    %cst_8 = arith.constant 9.99999974E-6 : f32
    %17 = vector.broadcast %cst_8 : f32 to vector<2x4x4xf32>
    %18 = arith.addf %16, %17 : vector<2x4x4xf32>
    %19 = math.sqrt %18 : vector<2x4x4xf32>
    %cst_9 = arith.constant 9.99999974E-6 : f32
    %20 = vector.broadcast %cst_9 : f32 to vector<2x4x4xf32>
    %21 = arith.addf %16, %20 : vector<2x4x4xf32>
    %22 = math.rsqrt %21 : vector<2x4x4xf32>
    %c0_10 = arith.constant 0 : index
    %c0_11 = arith.constant 0 : index
    %c0_12 = arith.constant 0 : index
    %23 = vector.load %arg4[%c0_10, %c0_11, %c0_12] : memref<2x4x4xf32, #tpu.memory_space<vmem>>, vector<2x4x4xf32>
    %cst_13 = arith.constant dense<0.000000e+00> : vector<4x4xf32>
    %24 = vector.multi_reduction <add>, %9, %cst_13 [0] : vector<2x4x4xf32> to vector<4x4xf32>
    %25 = vector.shape_cast %24 : vector<4x4xf32> to vector<1x4x4xf32>
    %cst_14 = arith.constant 2.000000e+00 : f32
    %26 = vector.broadcast %cst_14 : f32 to vector<1x4x4xf32>
    %27 = arith.divf %25, %26 : vector<1x4x4xf32>
    %28 = vector.broadcast %27 : vector<1x4x4xf32> to vector<2x4x4xf32>
    %29 = arith.subf %9, %28 : vector<2x4x4xf32>
    %30 = arith.mulf %29, %29 : vector<2x4x4xf32>
    %cst_15 = arith.constant dense<0.000000e+00> : vector<4x4xf32>
    %31 = vector.multi_reduction <add>, %30, %cst_15 [0] : vector<2x4x4xf32> to vector<4x4xf32>
    %32 = vector.shape_cast %31 : vector<4x4xf32> to vector<1x4x4xf32>
    %cst_16 = arith.constant 1.000000e+00 : f32
    %33 = vector.broadcast %cst_16 : f32 to vector<1x4x4xf32>
    %34 = arith.mulf %32, %33 : vector<1x4x4xf32>
    %cst_17 = arith.constant 9.99999974E-6 : f32
    %35 = vector.broadcast %cst_17 : f32 to vector<1x4x4xf32>
    %36 = arith.addf %34, %35 : vector<1x4x4xf32>
    %37 = math.sqrt %36 : vector<1x4x4xf32>
    %38 = vector.broadcast %37 : vector<1x4x4xf32> to vector<2x4x4xf32>
    %39 = arith.mulf %23, %38 : vector<2x4x4xf32>
    %40 = arith.addf %9, %39 : vector<2x4x4xf32>
    %c0_18 = arith.constant 0 : index
    %c0_19 = arith.constant 0 : index
    %c0_20 = arith.constant 0 : index
    %41 = vector.load %arg5[%c0_18, %c0_19, %c0_20] : memref<2x4x4xf32, #tpu.memory_space<vmem>>, vector<2x4x4xf32>
    %cst_21 = arith.constant dense<0.000000e+00> : vector<4x4xf32>
    %42 = vector.multi_reduction <add>, %19, %cst_21 [0] : vector<2x4x4xf32> to vector<4x4xf32>
    %43 = vector.shape_cast %42 : vector<4x4xf32> to vector<1x4x4xf32>
    %cst_22 = arith.constant 2.000000e+00 : f32
    %44 = vector.broadcast %cst_22 : f32 to vector<1x4x4xf32>
    %45 = arith.divf %43, %44 : vector<1x4x4xf32>
    %46 = vector.broadcast %45 : vector<1x4x4xf32> to vector<2x4x4xf32>
    %47 = arith.subf %19, %46 : vector<2x4x4xf32>
    %48 = arith.mulf %47, %47 : vector<2x4x4xf32>
    %cst_23 = arith.constant dense<0.000000e+00> : vector<4x4xf32>
    %49 = vector.multi_reduction <add>, %48, %cst_23 [0] : vector<2x4x4xf32> to vector<4x4xf32>
    %50 = vector.shape_cast %49 : vector<4x4xf32> to vector<1x4x4xf32>
    %cst_24 = arith.constant 1.000000e+00 : f32
    %51 = vector.broadcast %cst_24 : f32 to vector<1x4x4xf32>
    %52 = arith.mulf %50, %51 : vector<1x4x4xf32>
    %cst_25 = arith.constant 9.99999974E-6 : f32
    %53 = vector.broadcast %cst_25 : f32 to vector<1x4x4xf32>
    %54 = arith.addf %52, %53 : vector<1x4x4xf32>
    %55 = math.sqrt %54 : vector<1x4x4xf32>
    %56 = vector.broadcast %55 : vector<1x4x4xf32> to vector<2x4x4xf32>
    %57 = arith.mulf %41, %56 : vector<2x4x4xf32>
    %58 = arith.addf %19, %57 : vector<2x4x4xf32>
    %59 = arith.mulf %58, %22 : vector<2x4x4xf32>
    %60 = arith.mulf %9, %59 : vector<2x4x4xf32>
    %61 = arith.subf %40, %60 : vector<2x4x4xf32>
    %cst_26 = arith.constant 0.000000e+00 : f32
    %62 = vector.broadcast %cst_26 : f32 to vector<2x4x256xf32>
    %cst_27 = arith.constant 0.000000e+00 : f32
    %63 = vector.broadcast %cst_27 : f32 to vector<2x4x256xf32>
    %64 = vector.extract_strided_slice %0 {offsets = [0, 0, 0], sizes = [2, 1, 256], strides = [1, 1, 1]} : vector<2x4x256xf32> to vector<2x1x256xf32>
    %65 = vector.extract_strided_slice %59 {offsets = [0, 0, 0], sizes = [2, 4, 1], strides = [1, 1, 1]} : vector<2x4x4xf32> to vector<2x4x1xf32>
    %66 = vector.broadcast %64 : vector<2x1x256xf32> to vector<2x4x256xf32>
    %67 = vector.broadcast %65 : vector<2x4x1xf32> to vector<2x4x256xf32>
    %68 = arith.mulf %66, %67 : vector<2x4x256xf32>
    %69 = arith.addf %62, %68 : vector<2x4x256xf32>
    %70 = vector.extract_strided_slice %61 {offsets = [0, 0, 0], sizes = [2, 4, 1], strides = [1, 1, 1]} : vector<2x4x4xf32> to vector<2x4x1xf32>
    %71 = vector.broadcast %64 : vector<2x1x256xf32> to vector<2x4x256xf32>
    %72 = vector.broadcast %70 : vector<2x4x1xf32> to vector<2x4x256xf32>
    %73 = arith.mulf %71, %72 : vector<2x4x256xf32>
    %74 = arith.addf %63, %73 : vector<2x4x256xf32>
    %75 = vector.extract_strided_slice %0 {offsets = [0, 1, 0], sizes = [2, 1, 256], strides = [1, 1, 1]} : vector<2x4x256xf32> to vector<2x1x256xf32>
    %76 = vector.extract_strided_slice %59 {offsets = [0, 0, 1], sizes = [2, 4, 1], strides = [1, 1, 1]} : vector<2x4x4xf32> to vector<2x4x1xf32>
    %77 = vector.broadcast %75 : vector<2x1x256xf32> to vector<2x4x256xf32>
    %78 = vector.broadcast %76 : vector<2x4x1xf32> to vector<2x4x256xf32>
    %79 = arith.mulf %77, %78 : vector<2x4x256xf32>
    %80 = arith.addf %69, %79 : vector<2x4x256xf32>
    %81 = vector.extract_strided_slice %61 {offsets = [0, 0, 1], sizes = [2, 4, 1], strides = [1, 1, 1]} : vector<2x4x4xf32> to vector<2x4x1xf32>
    %82 = vector.broadcast %75 : vector<2x1x256xf32> to vector<2x4x256xf32>
    %83 = vector.broadcast %81 : vector<2x4x1xf32> to vector<2x4x256xf32>
    %84 = arith.mulf %82, %83 : vector<2x4x256xf32>
    %85 = arith.addf %74, %84 : vector<2x4x256xf32>
    %86 = vector.extract_strided_slice %0 {offsets = [0, 2, 0], sizes = [2, 1, 256], strides = [1, 1, 1]} : vector<2x4x256xf32> to vector<2x1x256xf32>
    %87 = vector.extract_strided_slice %59 {offsets = [0, 0, 2], sizes = [2, 4, 1], strides = [1, 1, 1]} : vector<2x4x4xf32> to vector<2x4x1xf32>
    %88 = vector.broadcast %86 : vector<2x1x256xf32> to vector<2x4x256xf32>
    %89 = vector.broadcast %87 : vector<2x4x1xf32> to vector<2x4x256xf32>
    %90 = arith.mulf %88, %89 : vector<2x4x256xf32>
    %91 = arith.addf %80, %90 : vector<2x4x256xf32>
    %92 = vector.extract_strided_slice %61 {offsets = [0, 0, 2], sizes = [2, 4, 1], strides = [1, 1, 1]} : vector<2x4x4xf32> to vector<2x4x1xf32>
    %93 = vector.broadcast %86 : vector<2x1x256xf32> to vector<2x4x256xf32>
    %94 = vector.broadcast %92 : vector<2x4x1xf32> to vector<2x4x256xf32>
    %95 = arith.mulf %93, %94 : vector<2x4x256xf32>
    %96 = arith.addf %85, %95 : vector<2x4x256xf32>
    %97 = vector.extract_strided_slice %0 {offsets = [0, 3, 0], sizes = [2, 1, 256], strides = [1, 1, 1]} : vector<2x4x256xf32> to vector<2x1x256xf32>
    %98 = vector.extract_strided_slice %59 {offsets = [0, 0, 3], sizes = [2, 4, 1], strides = [1, 1, 1]} : vector<2x4x4xf32> to vector<2x4x1xf32>
    %99 = vector.broadcast %97 : vector<2x1x256xf32> to vector<2x4x256xf32>
    %100 = vector.broadcast %98 : vector<2x4x1xf32> to vector<2x4x256xf32>
    %101 = arith.mulf %99, %100 : vector<2x4x256xf32>
    %102 = arith.addf %91, %101 : vector<2x4x256xf32>
    %103 = vector.extract_strided_slice %61 {offsets = [0, 0, 3], sizes = [2, 4, 1], strides = [1, 1, 1]} : vector<2x4x4xf32> to vector<2x4x1xf32>
    %104 = vector.broadcast %97 : vector<2x1x256xf32> to vector<2x4x256xf32>
    %105 = vector.broadcast %103 : vector<2x4x1xf32> to vector<2x4x256xf32>
    %106 = arith.mulf %104, %105 : vector<2x4x256xf32>
    %107 = arith.addf %96, %106 : vector<2x4x256xf32>
    %108 = arith.mulf %1, %102 : vector<2x4x256xf32>
    %109 = arith.addf %108, %107 : vector<2x4x256xf32>
    %c0_28 = arith.constant 0 : index
    %c0_29 = arith.constant 0 : index
    %c0_30 = arith.constant 0 : index
    %110 = vector.load %arg6[%c0_28, %c0_29, %c0_30] : memref<2x4x256xf32, #tpu.memory_space<vmem>>, vector<2x4x256xf32>
    tpu.vector_store %arg6[%c0_28, %c0_29, %c0_30], %109 {strides = array<i32>} : memref<2x4x256xf32, #tpu.memory_space<vmem>>, vector<2x4x256xf32>,
    return
  }
  func.func @transform_0(%arg0: i32) -> (i32, i32, i32) {
    %c0_i32 = arith.constant 0 : i32
    %c0_i32_0 = arith.constant 0 : i32
    %c0_i32_1 = arith.constant 0 : i32
    %c0_i32_2 = arith.constant 0 : i32
    return %c0_i32, %c0_i32_0, %c0_i32_1 : i32, i32, i32
  }
  func.func @transform_1(%arg0: i32) -> (i32, i32) {
    %c0_i32 = arith.constant 0 : i32
    %c0_i32_0 = arith.constant 0 : i32
    %c0_i32_1 = arith.constant 0 : i32
    return %c0_i32, %c0_i32_0 : i32, i32
  }
  func.func @transform_2(%arg0: i32) -> (i32, i32, i32) {
    %c0_i32 = arith.constant 0 : i32
    %c0_i32_0 = arith.constant 0 : i32
    %c0_i32_1 = arith.constant 0 : i32
    return %c0_i32, %arg0, %c0_i32_0 : i32, i32, i32
  }
  func.func @transform_3(%arg0: i32) -> (i32, i32, i32) {
    %c0_i32 = arith.constant 0 : i32
    %c0_i32_0 = arith.constant 0 : i32
    %c0_i32_1 = arith.constant 0 : i32
    return %c0_i32, %arg0, %c0_i32_0 : i32, i32, i32
  }
  func.func @transform_4(%arg0: i32) -> (i32, i32, i32) {
    %c0_i32 = arith.constant 0 : i32
    %c0_i32_0 = arith.constant 0 : i32
    %c0_i32_1 = arith.constant 0 : i32
    return %c0_i32, %arg0, %c0_i32_0 : i32, i32, i32
  }
  func.func @transform_5(%arg0: i32) -> (i32, i32, i32) {
    %c0_i32 = arith.constant 0 : i32
    %c0_i32_0 = arith.constant 0 : i32
    %c0_i32_1 = arith.constant 0 : i32
    return %c0_i32, %arg0, %c0_i32_0 : i32, i32, i32
  }
}

</mosaic_0001>

<bundles_post_ra>
// kernel: tpu_custom_call.1
= control target key start
LH: loop header
LB: loop body
LE: loop exit
PB: predicated region body
PF: predicated region fallthrough
CT: control target
= control target key end

     0   :  { %10 = vsyncpa [#allocation3], 0  ;;  %s1033_s0 = inlined_call_operand.hbm [shape: f32[2,4,256], index: 0, kind: input, shape index: {}]   ;;  %s1034_s1 = inlined_call_operand.vmem [shape: f32[2,4], index: 1, kind: input, shape index: {}]   ;;  %s1035_s2 = inlined_call_operand.hbm [shape: f32[2,4,256], index: 2, kind: input, shape index: {}]   ;;  %s1036_s3 = inlined_call_operand.vmem [shape: f32[2,4,4], index: 3, kind: input, shape index: {}]   ;;  %s1037_s4 = inlined_call_operand.hbm [shape: f32[2,4,4], index: 4, kind: input, shape index: {}]   ;;  %s1038_s5 = inlined_call_operand.hbm [shape: f32[2,4,256], index: 5, kind: output, shape index: {}]  }
   0x1   :  { %11 = vsyncpa [#allocation6], 0 }
   0x2   :  { %12 = vsyncpa [#allocation4], 0  ;;  %s818_s18 = smov [#allocation5]   ;;  %s819_s20 = smov [#allocation2]  }
   0x3   :  { %s32_s19 = sshll.u32 %s818_s18, 4  ;;  %s18_s21 = sshll.u32 %s819_s20, 4  ;;  %s33_s19 = int_to_ptr.vmem [resolvable:$true] %s32_s19  ;;  %s861_s21 = int_to_ptr.vmem [resolvable:$true] %s18_s21 }
   0x4   :  { %s724_s24 = scalar_lea.hbm %s1035_s2, 256 }
   0x5   :  { %p725_p0 = scmp.ne.s32.totalorder %s1035_s2, %s724_s24  ;;  %p728_p1 = scmp.lt.u32.totalorder %s724_s24, %s1035_s2 }
   0x7   :  { %p730_p2 = pnand %p728_p1, %p725_p0 }
   0x9   :  { %733 = shalt.err (!%p730_p2)
}
   0xa   :  { %s734_s29 = scalar_lea.vmem %s33_s19, 256  ;;  %p739_p4 = scmp.lt.s32.totalorder %s33_s19, %s33_s19 }
   0xb   :  { %p735_p3 = scmp.ne.s32.totalorder %s33_s19, %s734_s29  ;;  %p740_p5 = scmp.lt.s32.totalorder %s734_s29, %s734_s29 }
   0xd   :  { %p741_p6 = por %p740_p5, %p739_p4 }
   0xf   :  { %p742_p7 = pnand %p741_p6, %p735_p3 }
  0x11   :  { %745 = shalt.err (!%p742_p7)
}
  0x12   :  { %s820_s30 = smov 128   ;;  %s821_s6 = smov 8  }
  0x13   :  { %38 = dma.hbm_to_vmem [thread:$0]  %s1035_s2, 256, %s33_s19, [#allocation6], %s820_s30, %s820_s30, %s821_s6  }
  0x14   :  { %s746_s11 = scalar_lea.hbm %s1033_s0, 256 }
  0x15   :  { %p747_p8 = scmp.ne.s32.totalorder %s1033_s0, %s746_s11  ;;  %p750_p9 = scmp.lt.u32.totalorder %s746_s11, %s1033_s0 }
  0x17   :  { %p752_p10 = pnand %p750_p9, %p747_p8 }
  0x19   :  { %755 = shalt.err (!%p752_p10)
}
  0x1a   :  { %s756_s16 = scalar_lea.vmem %s861_s21, 256  ;;  %p761_p12 = scmp.lt.s32.totalorder %s861_s21, %s861_s21 }
  0x1b   :  { %p757_p11 = scmp.ne.s32.totalorder %s861_s21, %s756_s16  ;;  %p762_p13 = scmp.lt.s32.totalorder %s756_s16, %s756_s16 }
  0x1d   :  { %p763_p0 = por %p762_p13, %p761_p12 }
  0x1f   :  { %p764_p1 = pnand %p763_p0, %p757_p11 }
  0x21   :  { %767 = shalt.err (!%p764_p1)
}
  0x22   :  { %24 = dma.hbm_to_vmem [thread:$0]  %s1033_s0, 256, %s861_s21, [#allocation3], %s820_s30, %s820_s30, %s821_s6  }
  0x23   :  { %s822_s18 = smov [#allocation7]   ;;  %s768_s23 = scalar_lea.hbm %s1037_s4, 128 }
  0x24   :  { %s46_s19 = sshll.u32 %s822_s18, 4  ;;  %p769_p2 = scmp.ne.s32.totalorder %s1037_s4, %s768_s23  ;;  %s47_s19 = int_to_ptr.vmem [resolvable:$true] %s46_s19 }
  0x25   :  { %p772_p3 = scmp.lt.u32.totalorder %s768_s23, %s1037_s4 }
  0x27   :  { %p774_p4 = pnand %p772_p3, %p769_p2 }
  0x29   :  { %777 = shalt.err (!%p774_p4)
}
  0x2a   :  { %s778_s28 = scalar_lea.vmem %s47_s19, 128  ;;  %p783_p6 = scmp.lt.s32.totalorder %s47_s19, %s47_s19 }
  0x2b   :  { %p779_p5 = scmp.ne.s32.totalorder %s47_s19, %s778_s28  ;;  %p784_p7 = scmp.lt.s32.totalorder %s778_s28, %s778_s28 }
  0x2d   :  { %p785_p8 = por %p784_p7, %p783_p6 }
  0x2f   :  { %p786_p9 = pnand %p785_p8, %p779_p5 }
  0x31   :  { %789 = shalt.err (!%p786_p9)
}
  0x32   :  { %s823_s0 = smov 64   ;;  %s824_s21 = smov 4  }
  0x33   :  { %52 = dma.hbm_to_vmem [thread:$0]  %s1037_s4, 128, %s47_s19, [#allocation6], %s823_s0, %s823_s0, %s824_s21  }
  0x34   :  { %812 = dma.done.wait [#allocation3], 256  }
  0x35   :  { %813 = vsyncadd [#allocation3], 4294967040 }
  0x36   :  { %814 = dma.done.wait [#allocation6], 384  }
  0x37   :  { %815 = vsyncadd [#allocation6], 4294966912  ;;  %v910_v0 = vld [vmem:[#allocation2] sm:$0xff]  ;;  %v912_v1 = vld [vmem:[#allocation2 + $0x8] sm:$0xff]  ;;  %vm80_vm0 = vcmask 1043456   ;;  %v825_v16 = vmov 1   ;;  %v244_v20 = vlaneseq }
  0x38   :  { %v914_v2 = vld [vmem:[#allocation5] sm:$0xff]  ;;  %v86_v3 = vcombine.high %v910_v0, %v910_v0  ;;  %v159_v4 = vcombine.high %v912_v1, %v912_v1  ;;  %v924_v7 = vld [vmem:[#allocation5 + $0x8] sm:$0xff]  ;;  %700 = vset.pattern.permute.xlu1 %v825_v16  ;;  %v826_v17 = vmov 0   ;;  %v827_v18 = vmov 1966171168  }
  0x39   :  { %v66_v5 = vmul.f32 %v914_v2, %v914_v2  ;;  %v70_v6 = vcombine.high %v914_v2, %v914_v2  ;;  %v67_v8 = vmul.f32 %v924_v7, %v924_v7  ;;  %v71_v9 = vcombine.high %v924_v7, %v924_v7  ;;  %699 = vset.pattern.permute.xlu0 %v826_v17  ;;  %v685_v23 = vld.sshfl [vmem:[%s1034_s1] sm:$0x11 pattern:$0x75316420] }
  0x3a   :  { %88 = vmatprep.subr.mxu0 %v86_v3  ;;  %161 = vmatprep.subr.mxu1 %v159_v4  ;;  %v242_v19 = vunpack.c.l.s4 %v827_v18  ;;  %v940_v22 = vshrl.u32 %v244_v20, 7  ;;  %v240_v25 = vcombine.high %v685_v23, %v685_v23  ;;  %vm299_vm1 = vcmask 27648  }
  0x3b   :  { %v82_v10 = vsel %vm80_vm0, %v70_v6, %v66_v5  ;;  %v76_v11 = vcombine.low %v66_v5, %v66_v5  ;;  %89 = vmatpush1.xpose.msra.mxu0 %v910_v0  ;;  %162 = vmatpush1.xpose.msra.mxu1 %v912_v1  ;;  %v84_v12 = vsel %vm80_vm0, %v71_v9, %v67_v8  ;;  %vm326_vm2 = vcmask 31748  }
  0x3c   :  { %v77_v13 = vcombine.low %v67_v8, %v67_v8  ;;  %152 = vmatprep.mubr.f32.mxu0 %v82_v10  ;;  %225 = vmatprep.mubr.f32.mxu1 %v84_v12  ;;  %v243_v21 = vunpack.c.0.s8 %v242_v19  ;;  %v947_v27 = vsub.s32 0, %v940_v22 }
  0x3d   :  { %v81_v14 = vsel %vm80_vm0, %v914_v2, %v76_v11 }
  0x3e   :  { %v83_v15 = vsel %vm80_vm0, %v924_v7, %v77_v13  ;;  %153 = vmatmul.mubr.f32.vlgmr.msra.gmra.mrb[0].mxu0 %v81_v14  ;;  %v246_v24 = vsub.s32 %v243_v21, %v940_v22 }
  0x3f   :  { %226 = vmatmul.mubr.f32.vlgmr.msra.gmra.mrb[0].mxu1 %v83_v15 }
  0x40   :  { %v247_v26 = vrot.slane %v685_v23, %v246_v24  ;;  %v254_v28 = vrot.slane %v240_v25, %v246_v24 }
  0x42   :  { %v258_v29 = vrot.slane %v247_v26, %v947_v27  ;;  %v262_v30 = vrot.slane %v254_v28, %v947_v27 }
 0x111   :  { %v154_v31 = vpop.f32.mrb[0].mxu0 }
 0x112   :  { %v227_v32 = vpop.f32.mrb[0].mxu1  ;;  %v951_v33 = vmul.f32 %v258_v29, %v154_v31  ;;  %v156_v35 = vpop.f32.mrb[1].mxu0  ;;  %v324_v29 = vld [vmem:[#allocation7] sm:$0xf]  ;;  %v325_v31 = vld [vmem:[#allocation7 + $0x4] sm:$0xf] }
 0x113   :  { %v953_v34 = vmul.f32 %v262_v30, %v227_v32  ;;  %v229_v36 = vpop.f32.mrb[1].mxu1 }
 0x114   :  { %v267_v37 = vmul.f32 %v951_v33, %v951_v33  ;;  %v300_v49 = vsel %vm299_vm1, %v951_v33, 0.0 }
 0x115   :  { %v268_v38 = vmul.f32 %v953_v34, %v953_v34  ;;  %v301_v51 = vsel %vm299_vm1, %v953_v34, 0.0 }
 0x116   :  { %v271_v39 = vrot.slane %v267_v37, 4  ;;  %v302_v60 = vadd.f32 %v301_v51, %v300_v49  ;;  %v828_v49 = vmov 2  }
 0x117   :  { %v272_v40 = vrot.slane %v268_v38, 4 }
 0x118   :  { %v275_v41 = vsub.f32 %v951_v33, %v271_v39  ;;  %v304_v3 = vmul.f32 0.5, %v302_v60 }
 0x119   :  { %v276_v42 = vsub.f32 %v953_v34, %v272_v40 }
 0x11a   :  { %v277_v43 = vmax.f32 %v275_v41, 0.0  ;;  %v305_v9 = vsub.f32 %v951_v33, %v304_v3  ;;  %v306_v10 = vsub.f32 %v953_v34, %v304_v3 }
 0x11b   :  { %v278_v44 = vmax.f32 %v276_v42, 0.0 }
 0x11c   :  { %v279_v45 = vadd.f32 1e-05, %v277_v43  ;;  %v307_v14 = vmul.f32 %v305_v9, %v305_v9  ;;  %v308_v15 = vmul.f32 %v306_v10, %v306_v10  ;;  %v579_v9 = vsub.s32 3, %v940_v22 }
 0x11d   :  { %v280_v46 = vadd.f32 1e-05, %v278_v44  ;;  %v583_v10 = vsub.s32 7, %v940_v22 }
 0x11e   :  { %vm283_vm4 = vcmp.eq.f32.partialorder %v279_v45, inf  ;;  %v286_v54 = vand.u32 2147483648, %v279_v45  ;;  %vm285_vm6 = vcmp.eq.f32.partialorder %v279_v45, 0.0  ;;  %v309_v19 = vsel %vm299_vm1, %v307_v14, 0.0 }
 0x11f   :  { %716 = vrsqrt.f32 %v280_v46  ;;  %vm290_vm3 = vcmp.eq.f32.partialorder %v280_v46, inf  ;;  %v293_v53 = vand.u32 2147483648, %v280_v46  ;;  %vm292_vm5 = vcmp.eq.f32.partialorder %v280_v46, 0.0 }
 0x120   :  { %718 = vrsqrt.f32 %v279_v45  ;;  %v310_v20 = vsel %vm299_vm1, %v308_v15, 0.0 }
 0x121   :  { %v311_v21 = vadd.f32 %v310_v20, %v309_v19 }
 0x123   :  { %v312_v23 = vadd.f32 1e-05, %v311_v21 }
 0x125   :  { %vm315_vm9 = vcmp.eq.f32.partialorder %v312_v23, inf  ;;  %vm317_vm10 = vcmp.eq.f32.partialorder %v312_v23, 0.0 }
 0x129   :  { %v717_v47 = vpop.eup %716 }
 0x12a   :  { %v719_v48 = vpop.eup %718  ;;  %v289_v50 = vmul.f32 %v717_v47, %v280_v46 }
 0x12b   :  { %v282_v52 = vmul.f32 %v719_v48, %v279_v45 }
 0x12c   :  { %v291_v55 = vsel %vm290_vm3, %v280_v46, %v289_v50  ;;  %v318_v46 = vand.u32 2147483648, %v312_v23  ;;  %v298_v50 = vld [vmem:[%s1036_s3 + $0x4] sm:$0xf] }
 0x12d   :  { %v284_v56 = vsel %vm283_vm4, %v279_v45, %v282_v52  ;;  %v294_v57 = vsel %vm292_vm5, %v293_v53, %v291_v55  ;;  %v829_v55 = vmov 3  }
 0x12e   :  { %v287_v58 = vsel %vm285_vm6, %v286_v54, %v284_v56  ;;  %v328_v59 = vsel %vm326_vm2, %v294_v57, 0.0 }
 0x12f   :  { %v327_v61 = vsel %vm326_vm2, %v287_v58, 0.0 }
 0x130   :  { %v329_v62 = vadd.f32 %v328_v59, %v327_v61 }
 0x132   :  { %v330_v63 = vmul.f32 0.5, %v329_v62 }
 0x134   :  { %v331_v4 = vsub.f32 %v287_v58, %v330_v63  ;;  %v332_v5 = vsub.f32 %v294_v57, %v330_v63 }
 0x136   :  { %v333_v6 = vmul.f32 %v331_v4, %v331_v4  ;;  %v334_v8 = vmul.f32 %v332_v5, %v332_v5  ;;  %v443_v4 = vsub.s32 1, %v940_v22  ;;  %v447_v5 = vsub.s32 5, %v940_v22 }
 0x138   :  { %v335_v11 = vsel %vm326_vm2, %v333_v6, 0.0  ;;  %v336_v12 = vsel %vm326_vm2, %v334_v8, 0.0  ;;  %v511_v6 = vsub.s32 2, %v940_v22  ;;  %v515_v8 = vsub.s32 6, %v940_v22 }
 0x139   :  { %v337_v13 = vadd.f32 %v336_v12, %v335_v11  ;;  %v452_v11 = vrot.slane %v912_v1, %v443_v4  ;;  %v456_v12 = vrot.slane %v912_v1, %v447_v5  ;;  %v444_v15 = vrot.slane %v910_v0, %v443_v4 }
 0x13a   :  { %v520_v20 = vrot.slane %v912_v1, %v511_v6  ;;  %v524_v21 = vrot.slane %v912_v1, %v515_v8 }
 0x13b   :  { %v338_v18 = vadd.f32 1e-05, %v337_v13  ;;  %v382_v13 = vrot.slane %v912_v1, %v947_v27 }
 0x13d   :  { %720 = vrsqrt.f32 %v338_v18  ;;  %vm341_vm7 = vcmp.eq.f32.partialorder %v338_v18, inf  ;;  %v344_v26 = vand.u32 2147483648, %v338_v18  ;;  %vm343_vm8 = vcmp.eq.f32.partialorder %v338_v18, 0.0 }
 0x13e   :  { %722 = vrsqrt.f32 %v312_v23 }
 0x147   :  { %v721_v24 = vpop.eup %720 }
 0x148   :  { %v340_v25 = vmul.f32 %v721_v24, %v338_v18  ;;  %v723_v40 = vpop.eup %722 }
 0x149   :  { %v314_v43 = vmul.f32 %v723_v40, %v312_v23  ;;  %v580_v40 = vrot.slane %v910_v0, %v579_v9 }
 0x14a   :  { %v342_v28 = vsel %vm341_vm7, %v338_v18, %v340_v25  ;;  %v448_v18 = vrot.slane %v910_v0, %v447_v5  ;;  %v588_v25 = vrot.slane %v912_v1, %v579_v9 }
 0x14b   :  { %v345_v30 = vsel %vm343_vm8, %v344_v26, %v342_v28  ;;  %v316_v45 = vsel %vm315_vm9, %v312_v23, %v314_v43  ;;  %v592_v26 = vrot.slane %v912_v1, %v583_v10  ;;  %v472_v28 = vrot.slane %v452_v11, %v443_v4 }
 0x14c   :  { %v347_v32 = vrot.slane %v345_v30, 4  ;;  %v319_v51 = vsel %vm317_vm10, %v318_v46, %v316_v45  ;;  %v402_v30 = vrot.slane %v382_v13, %v947_v27 }
 0x14d   :  { %v321_v53 = vmul.f32 %v319_v51, %v298_v50  ;;  %v612_v45 = vrot.slane %v592_v26, %v579_v9 }
 0x14e   :  { %v349_v35 = vmul.f32 %v347_v32, %v324_v29  ;;  %v350_v36 = vmul.f32 %v347_v32, %v325_v31  ;;  %v476_v29 = vrot.slane %v456_v12, %v443_v4  ;;  %v464_v32 = vrot.slane %v444_v15, %v443_v4 }
 0x150   :  { %v353_v37 = vrot.slane %v349_v35, 4  ;;  %v354_v38 = vrot.slane %v350_v36, 4  ;;  %v468_v35 = vrot.slane %v448_v18, %v443_v4  ;;  %v512_v36 = vrot.slane %v910_v0, %v511_v6 }
 0x152   :  { %v357_v39 = vadd.f32 %v353_v37, %v287_v58  ;;  %v358_v42 = vadd.f32 %v354_v38, %v294_v57  ;;  %v323_v58 = vadd.f32 %v321_v53, %v953_v34  ;;  %v516_v37 = vrot.slane %v910_v0, %v515_v8 }
 0x153   :  { %v540_v38 = vrot.slane %v520_v20, %v511_v6 }
 0x154   :  { %v359_v41 = vmul.f32 %v719_v48, %v357_v39  ;;  %v360_v44 = vmul.f32 %v717_v47, %v358_v42  ;;  %v297_v48 = vld [vmem:[%s1036_s3] sm:$0xf]  ;;  %v544_v39 = vrot.slane %v524_v21, %v511_v6  ;;  %s830_s3 = smov [#allocation8]  }
 0x155   :  { %v320_v54 = vmul.f32 %v319_v51, %v297_v48  ;;  %s672_s12 = sshll.u32 %s830_s3, 4  ;;  %s673_s12 = int_to_ptr.vmem [resolvable:$true] %s672_s12 }
 0x156   :  { %478 = vperm.xlu1 %700, %v359_v41   ;;  %408 = vperm.xlu0 %699, %v359_v41   ;;  %v364_v47 = vrot.slane %v360_v44, 4  ;;  %v363_v52 = vrot.slane %v359_v41, 4  ;;  %s790_s13 = scalar_lea.vmem %s673_s12, 256  ;;  %p795_p11 = scmp.lt.s32.totalorder %s673_s12, %s673_s12 }
 0x157   :  { %v322_v59 = vadd.f32 %v320_v54, %v951_v33  ;;  %p791_p10 = scmp.ne.s32.totalorder %s673_s12, %s790_s13  ;;  %p796_p12 = scmp.lt.s32.totalorder %s790_s13, %s790_s13 }
 0x158   :  { %v368_v56 = vmul.f32 %v364_v47, %v953_v34  ;;  %v367_v57 = vmul.f32 %v363_v52, %v951_v33  ;;  %v532_v47 = vrot.slane %v512_v36, %v511_v6  ;;  %v536_v52 = vrot.slane %v516_v37, %v511_v6 }
 0x159   :  { %p797_p13 = por %p796_p12, %p795_p11 }
 0x15a   :  { %482 = vperm.xlu1 %700, %v360_v44   ;;  %412 = vperm.xlu0 %699, %v360_v44   ;;  %v370_v60 = vsub.f32 %v323_v58, %v368_v56  ;;  %v369_v61 = vsub.f32 %v322_v59, %v367_v57 }
 0x15b   :  { %p798_p0 = pnand %p797_p13, %p791_p10 }
 0x15e   :  { %701 = vset.pattern.permute.xlu1 %v828_v49  ;;  %702 = vset.pattern.permute.xlu0 %v828_v49 }
 0x15f   :  { %546 = vperm.xlu1 %701, %v359_v41   ;;  %550 = vperm.xlu0 %702, %v360_v44  }
 0x163   :  { %704 = vset.pattern.permute.xlu1 %v829_v55  ;;  %703 = vset.pattern.permute.xlu0 %v829_v55 }
 0x164   :  { %618 = vperm.xlu1 %704, %v360_v44   ;;  %614 = vperm.xlu0 %703, %v359_v41   ;;  %v584_v41 = vrot.slane %v910_v0, %v583_v10  ;;  %v608_v44 = vrot.slane %v588_v25, %v579_v9 }
 0x166   :  { %v604_v56 = vrot.slane %v584_v41, %v579_v9 }
 0x168   :  { %706 = vset.pattern.permute.xlu1 %v826_v17  ;;  %705 = vset.pattern.permute.xlu0 %v826_v17 }
 0x169   :  { %430 = vperm.xlu1 %706, %v370_v60   ;;  %425 = vperm.xlu0 %705, %v369_v61  }
 0x16d   :  { %708 = vset.pattern.permute.xlu1 %v825_v16  ;;  %707 = vset.pattern.permute.xlu0 %v825_v16  ;;  %v377_v16 = vsub.s32 4, %v940_v22  ;;  %v374_v22 = vrot.slane %v910_v0, %v947_v27 }
 0x16e   :  { %498 = vperm.xlu1 %708, %v370_v60   ;;  %494 = vperm.xlu0 %707, %v369_v61  }
 0x16f   :  { %v386_v14 = vrot.slane %v912_v1, %v377_v16  ;;  %v378_v24 = vrot.slane %v910_v0, %v377_v16  ;;  %v394_v1 = vrot.slane %v374_v22, %v947_v27 }
 0x171   :  { %v406_v31 = vrot.slane %v386_v14, %v947_v27  ;;  %v398_v43 = vrot.slane %v378_v24, %v947_v27 }
 0x172   :  { %709 = vset.pattern.permute.xlu1 %v828_v49  ;;  %711 = vset.pattern.permute.xlu0 %v829_v55 }
 0x173   :  { %562 = vperm.xlu1 %709, %v369_v61   ;;  %634 = vperm.xlu0 %711, %v370_v60  }
 0x177   :  { %566 = vperm.xlu1 %709, %v370_v60  }
 0x17b   :  { %710 = vset.pattern.permute.xlu1 %v829_v55  ;;  %v600_v55 = vrot.slane %v580_v40, %v579_v9 }
 0x17c   :  { %630 = vperm.xlu1 %710, %v369_v61  }
 0x1d5   :  { %v479_v33 = vpop.permute.xlu1 %478  ;;  %v409_v34 = vpop.permute.xlu0 %408 }
 0x1d6   :  { %v485_v57 = vmul.f32 %v479_v33, %v464_v32  ;;  %v486_v0 = vmul.f32 %v479_v33, %v468_v35  ;;  %v415_v58 = vmul.f32 %v409_v34, %v394_v1  ;;  %v416_v59 = vmul.f32 %v409_v34, %v398_v43 }
 0x1d8   :  { %v489_v11 = vadd.f32 %v485_v57, %v415_v58  ;;  %v490_v12 = vadd.f32 %v486_v0, %v416_v59 }
 0x1d9   :  { %v483_v62 = vpop.permute.xlu1 %482  ;;  %v413_v63 = vpop.permute.xlu0 %412 }
 0x1da   :  { %v487_v46 = vmul.f32 %v483_v62, %v472_v28  ;;  %v488_v49 = vmul.f32 %v483_v62, %v476_v29  ;;  %v417_v50 = vmul.f32 %v413_v63, %v402_v30  ;;  %v418_v51 = vmul.f32 %v413_v63, %v406_v31 }
 0x1dc   :  { %v491_v61 = vadd.f32 %v487_v46, %v417_v50  ;;  %v492_v27 = vadd.f32 %v488_v49, %v418_v51 }
 0x1de   :  { %v547_v17 = vpop.permute.xlu1 %546  ;;  %v551_v3 = vpop.permute.xlu0 %550 }
 0x1df   :  { %v555_v53 = vmul.f32 %v551_v3, %v540_v38  ;;  %v556_v54 = vmul.f32 %v551_v3, %v544_v39  ;;  %v553_v16 = vmul.f32 %v547_v17, %v532_v47  ;;  %v554_v62 = vmul.f32 %v547_v17, %v536_v52 }
 0x1e1   :  { %v559_v8 = vadd.f32 %v555_v53, %v491_v61  ;;  %v560_v63 = vadd.f32 %v556_v54, %v492_v27  ;;  %v557_v33 = vadd.f32 %v553_v16, %v489_v11  ;;  %v558_v18 = vadd.f32 %v554_v62, %v490_v12 }
 0x1e3   :  { %v619_v19 = vpop.permute.xlu1 %618  ;;  %v615_v23 = vpop.permute.xlu0 %614 }
 0x1e4   :  { %v623_v4 = vmul.f32 %v619_v19, %v608_v44  ;;  %v624_v5 = vmul.f32 %v619_v19, %v612_v45  ;;  %v621_v6 = vmul.f32 %v615_v23, %v600_v55  ;;  %v622_v9 = vmul.f32 %v615_v23, %v604_v56 }
 0x1e6   :  { %v627_v3 = vadd.f32 %v623_v4, %v559_v8  ;;  %v628_v13 = vadd.f32 %v624_v5, %v560_v63  ;;  %v625_v20 = vadd.f32 %v621_v6, %v557_v33  ;;  %v626_v24 = vadd.f32 %v622_v9, %v558_v18 }
 0x1e8   :  { %v431_v42 = vpop.permute.xlu1 %430  ;;  %v426_v48 = vpop.permute.xlu0 %425  ;;  %v650_v19 = vcombine.high %v627_v3, %v628_v13 }
 0x1e9   :  { %v435_v21 = vmul.f32 %v431_v42, %v402_v30  ;;  %v436_v22 = vmul.f32 %v431_v42, %v406_v31  ;;  %v433_v49 = vmul.f32 %v426_v48, %v394_v1  ;;  %v434_v23 = vmul.f32 %v426_v48, %v398_v43 }
 0x1ea   :  { %v649_v42 = vcombine.high %v625_v20, %v626_v24 }
 0x1ed   :  { %v499_v60 = vpop.permute.xlu1 %498  ;;  %v495_v10 = vpop.permute.xlu0 %494 }
 0x1ee   :  { %v503_v15 = vmul.f32 %v499_v60, %v472_v28  ;;  %v504_v34 = vmul.f32 %v499_v60, %v476_v29  ;;  %v501_v17 = vmul.f32 %v495_v10, %v464_v32  ;;  %v502_v25 = vmul.f32 %v495_v10, %v468_v35 }
 0x1f0   :  { %v507_v37 = vadd.f32 %v503_v15, %v435_v21  ;;  %v508_v40 = vadd.f32 %v504_v34, %v436_v22  ;;  %v505_v30 = vadd.f32 %v501_v17, %v433_v49  ;;  %v506_v31 = vadd.f32 %v502_v25, %v434_v23 }
 0x1f2   :  { %v563_v14 = vpop.permute.xlu1 %562  ;;  %v635_v26 = vpop.permute.xlu0 %634 }
 0x1f3   :  { %v569_v50 = vmul.f32 %v563_v14, %v532_v47  ;;  %v570_v51 = vmul.f32 %v563_v14, %v536_v52  ;;  %v639_v28 = vmul.f32 %v635_v26, %v608_v44  ;;  %v640_v29 = vmul.f32 %v635_v26, %v612_v45 }
 0x1f4   :  { %v653_v45 = vmul.f32 %v649_v42, %v914_v2 }
 0x1f5   :  { %v573_v0 = vadd.f32 %v569_v50, %v505_v30  ;;  %v574_v58 = vadd.f32 %v570_v51, %v506_v31 }
 0x1f6   :  { %v567_v36 = vpop.permute.xlu1 %566 }
 0x1f7   :  { %v571_v41 = vmul.f32 %v567_v36, %v540_v38  ;;  %v572_v46 = vmul.f32 %v567_v36, %v544_v39  ;;  %v654_v38 = vmul.f32 %v650_v19, %v924_v7 }
 0x1f9   :  { %v575_v53 = vadd.f32 %v571_v41, %v507_v37  ;;  %v576_v54 = vadd.f32 %v572_v46, %v508_v40 }
 0x1fb   :  { %v643_v57 = vadd.f32 %v639_v28, %v575_v53  ;;  %v644_v32 = vadd.f32 %v640_v29, %v576_v54  ;;  %v631_v35 = vpop.permute.xlu1 %630 }
 0x1fc   :  { %v637_v59 = vmul.f32 %v631_v35, %v600_v55  ;;  %v638_v60 = vmul.f32 %v631_v35, %v604_v56 }
 0x1fd   :  { %v660_v39 = vcombine.low %v643_v57, %v644_v32 }
 0x1fe   :  { %v641_v1 = vadd.f32 %v637_v59, %v573_v0  ;;  %v642_v43 = vadd.f32 %v638_v60, %v574_v58 }
 0x1ff   :  { %v664_v48 = vadd.f32 %v660_v39, %v654_v38 }
 0x200   :  { %v659_v44 = vcombine.low %v641_v1, %v642_v43 }
 0x201   :  { %666 = vst [vmem:[#allocation8 + $0x8] sm:$0xff] %v664_v48 }
 0x202   :  { %v663_v47 = vadd.f32 %v659_v44, %v653_v45 }
 0x204   :  { %665 = vst [vmem:[#allocation8] sm:$0xff] %v663_v47 }
 0x205   :  { %801 = shalt.err (!%p798_p0)
}
 0x206   :  { %s802_s16 = scalar_lea.hbm %s1038_s5, 256 }
 0x207   :  { %p803_p1 = scmp.ne.s32.totalorder %s1038_s5, %s802_s16  ;;  %p806_p2 = scmp.lt.u32.totalorder %s802_s16, %s1038_s5 }
 0x209   :  { %p808_p3 = pnand %p806_p2, %p803_p1 }
 0x20b   :  { %811 = shalt.err (!%p808_p3)
}
 0x20c   :  { %678 = dma.vmem_to_hbm [thread:$0]  %s673_s12, 256, %s1038_s5, [#allocation4], %s820_s30, %s820_s30, %s821_s6  }
 0x20d   :  { %816 = dma.done.wait [#allocation4], 256  }
 0x20e   :  { %817 = vsyncadd [#allocation4], 4294967040 }
 0x20f   :  { %682 = vsyncpa [#allocation3], 1 }
 0x210   :  { %683 = vsyncpa [#allocation6], 1 }
 0x211   :  { %684 = vsyncpa [#allocation4], 1 }

</bundles_post_ra>
